<compile_context>
chip_gen: v5e
topology: v5e:2x2
jax: 0.10.0
libtpu: 0.0.40
codegen_flags: <defaults>
</compile_context>

<pallas_src>
import functools

import jax
import jax.numpy as jnp
from jax.experimental import pallas as pl
from jax.experimental.pallas import tpu as pltpu


# ----------------------------------------------------------------------------
# Helpers
# ----------------------------------------------------------------------------
def _round_up(n, m):
    return ((n + m - 1) // m) * m


def _pad_2d(a, rows, cols):
    r, c = a.shape
    return jnp.pad(a, ((0, rows - r), (0, cols - c)))


def _single_buffer_kwargs():
    """Single-buffering for VMEM-resident operands with a constant index_map.

    Feature-detected so the kernel still lowers on Pallas versions without
    BlockSpec(pipeline_mode=...)."""
    try:
        probe = pl.BlockSpec((8, 128), lambda i: (0, 0), pipeline_mode=pl.Buffered(1))
        del probe
        return {"pipeline_mode": pl.Buffered(1)}
    except Exception:
        return {}


# ----------------------------------------------------------------------------
# Fused MLP kernel: for one batch tile, run every Linear(+ReLU) back to back.
# Activations stay in vregs/VMEM; only the final layer output is stored.
# ----------------------------------------------------------------------------
def _fused_mlp_kernel(x_ref, *refs, n_layers):
    o_ref = refs[-1]
    wb_refs = refs[:-1]  # (w0, b0, w1, b1, ..., w_{L-1}, b_{L-1})
    h = x_ref[...]                                   # f32 (TILE_B, D0_pad)
    for li in range(n_layers):
        w = wb_refs[2 * li][...]                     # bf16 (Din_pad, Dout_pad)
        b = wb_refs[2 * li + 1][...]                 # f32  (1, Dout_pad) -> broadcasts
        y = jnp.dot(h.astype(w.dtype), w, preferred_element_type=jnp.float32) + b
        if li < n_layers - 1:                        # hidden layers: ReLU; output layer: none
            y = jnp.maximum(y, 0.0)
        h = y
    o_ref[...] = h.astype(o_ref.dtype)


# ----------------------------------------------------------------------------
# Factory: pad/cast params once, return a jitted forward(x).
# ----------------------------------------------------------------------------
def make_mlp_decoder_forward(params, *, tile_b=256, weight_dtype=jnp.bfloat16):
    """params: list of (w: (Din, Dout) f32, b: (Dout,) f32). Returns forward(x)."""
    n_layers = len(params)
    dims = [params[0][0].shape[0]] + [w.shape[1] for w, _ in params]
    dims_pad = [_round_up(d, 128) for d in dims]     # lane axis -> multiples of 128
    out_dim = dims[-1]

    # Pad + cast ONCE; every forward call reuses these cached arrays.
    padded_wb = []
    for li, (w, b) in enumerate(params):
        padded_wb.append(
            _pad_2d(w.astype(jnp.float32), dims_pad[li], dims_pad[li + 1]).astype(weight_dtype))
        padded_wb.append(
            _pad_2d(b.reshape(1, -1).astype(jnp.float32), 1, dims_pad[li + 1]))
    padded_wb = tuple(jax.block_until_ready(padded_wb))

    w_itemsize = jnp.dtype(weight_dtype).itemsize
    weight_bytes = sum(dims_pad[li] * dims_pad[li + 1] for li in range(n_layers)) * w_itemsize
    bias_bytes = sum(dims_pad[li + 1] for li in range(n_layers)) * 4

    sb_kwargs = _single_buffer_kwargs()
    wb_buffers = 1 if sb_kwargs else 2

    # Generation-aware VMEM cap (v7x: 64 MiB/TC, v5e/v6e: 128 MiB).
    try:
        vmem_cap = int(pltpu.get_tpu_info().vmem_capacity_bytes)
        if vmem_cap < (32 << 20):
            vmem_cap = 64 << 20
    except Exception:
        vmem_cap = 64 << 20  # conservative fallback (v7x per-TensorCore VMEM)

    def _forward(x, *wb):
        B, Din = x.shape
        assert Din == dims[0], "input feature dim mismatch"

        # Batch tile: multiple of 16 (bf16 sublane packing), large enough to fill the
        # MXU M dim / amortize per-grid-step overhead, shrunk if VMEM would overflow.
        tb = max(16, min(_round_up(tile_b, 16), _round_up(B, 16)))

        def working_set(tb_):
            io_tiles = 2 * (tb_ * dims_pad[0] * 4 + tb_ * dims_pad[-1] * 4)  # double-buffered x/out
            live_act = 4 * tb_ * max(dims_pad) * 4                           # loop-carried acts + slack
            return wb_buffers * (weight_bytes + bias_bytes) + io_tiles + live_act

        while tb > 16 and working_set(tb) > int(0.75 * vmem_cap):
            tb = max(16, _round_up(tb // 2, 16))
        # TODO(synk): if the weight stack alone exceeds the VMEM budget (large hidden
        # dims on v7x), add an output-feature (N) grid axis for the largest layer
        # instead of keeping every weight fully resident.
        TILE_B = tb
        B_pad = _round_up(B, TILE_B)

        x_pad = _pad_2d(x.astype(jnp.float32), B_pad, dims_pad[0])
        # TODO(synk): for one-hot inputs the first matmul could be replaced by a
        # scalar-prefetched row gather of W1 (PrefetchScalarGridSpec); kept dense to
        # preserve the module's generic forward(x) semantics.

        # Activations tiled over batch; weights/biases full-block, VMEM-resident,
        # single-buffered (constant index_map -> never re-DMA'd).
        in_specs = [pl.BlockSpec((TILE_B, dims_pad[0]), lambda i: (i, 0))]
        for li in range(n_layers):
            in_specs.append(
                pl.BlockSpec((dims_pad[li], dims_pad[li + 1]), lambda i: (0, 0), **sb_kwargs))
            in_specs.append(
                pl.BlockSpec((1, dims_pad[li + 1]), lambda i: (0, 0), **sb_kwargs))
        out_spec = pl.BlockSpec((TILE_B, dims_pad[-1]), lambda i: (i, 0))

        flops = 2 * B_pad * sum(dims_pad[li] * dims_pad[li + 1] for li in range(n_layers))
        bytes_accessed = (B_pad * dims_pad[0] * 4 + B_pad * dims_pad[-1] * 4
                          + weight_bytes + bias_bytes)
        vmem_limit = int(min(max(working_set(TILE_B) + (8 << 20), 16 << 20),
                             vmem_cap, 100 << 20))

        kernel = functools.partial(_fused_mlp_kernel, n_layers=n_layers)
        out_pad = pl.pallas_call(
            kernel,
            out_shape=jax.ShapeDtypeStruct((B_pad, dims_pad[-1]), jnp.float32),
            grid=(B_pad // TILE_B,),
            in_specs=in_specs,
            out_specs=out_spec,
            compiler_params=pltpu.CompilerParams(
                dimension_semantics=("parallel",),
                vmem_limit_bytes=vmem_limit,
            ),
            cost_estimate=pl.CostEstimate(
                flops=flops, transcendentals=0, bytes_accessed=bytes_accessed),
        )(x_pad, *wb)

        return out_pad[:B, :out_dim]

    fwd = jax.jit(_forward)
    return lambda x: fwd(x, *padded_wb)


# ----------------------------------------------------------------------------
# Parameter init mimicking PyTorch nn.Linear default (U[-1/sqrt(fan_in), +]).
# ----------------------------------------------------------------------------
def init_mlp_decoder_params(key, input_size, output_size, hidden_sizes):
    params = []
    sizes = [input_size] + list(hidden_sizes) + [output_size]
    for i in range(len(sizes) - 1):
        fan_in, fan_out = sizes[i], sizes[i + 1]
        key, kw, kb = jax.random.split(key, 3)
        bound = 1.0 / jnp.sqrt(jnp.float32(fan_in))
        w = jax.random.uniform(kw, (fan_in, fan_out), jnp.float32, -bound, bound)
        b = jax.random.uniform(kb, (fan_out,), jnp.float32, -bound, bound)
        params.append((w, b))
    return params


if __name__ == "__main__":
    # Vocabulary derived deterministically from the text (sorted for determinism).
    text_data = "這是範例文本，用於展示如何建立語言模型。我們將使用前幾個詞預測下一個詞。"
    word_list = sorted(set(text_data))
    input_size = len(word_list)
    output_size = len(word_list)
    hidden_sizes = [32, 32]
    batch = 8

    key = jax.random.PRNGKey(0)
    key, k_params, k_idx = jax.random.split(key, 3)

    params = init_mlp_decoder_params(k_params, input_size, output_size, hidden_sizes)
    forward = make_mlp_decoder_forward(params)  # pads/casts weights ONCE, returns jitted fn

    # Batch of one-hot encoded characters (typical input for this decoder).
    idx = jax.random.randint(k_idx, (batch,), 0, input_size)
    x = jax.nn.one_hot(idx, input_size, dtype=jnp.float32)  # (batch, input_size)

    out = forward(x)
    out = jax.block_until_ready(out)
    assert out.shape == (batch, output_size)

    # Reference 1: exact f32 math of the module (loose tolerance: kernel uses bf16 MXU).
    ref_f32 = x
    for w, b in params[:-1]:
        ref_f32 = jnp.maximum(ref_f32 @ w + b, 0.0)
    ref_f32 = ref_f32 @ params[-1][0] + params[-1][1]
    assert jnp.allclose(out, ref_f32, atol=5e-2, rtol=5e-2), (
        float(jnp.max(jnp.abs(out - ref_f32))))

    # Reference 2: same bf16-weight / f32-accumulate math as the kernel (tight tolerance).
    ref_bf = x
    for li, (w, b) in enumerate(params):
        y = jnp.dot(ref_bf.astype(jnp.bfloat16), w.astype(jnp.bfloat16),
                    preferred_element_type=jnp.float32) + b
        ref_bf = jnp.maximum(y, 0.0) if li < len(params) - 1 else y
    assert jnp.allclose(out, ref_bf, atol=2e-3, rtol=2e-3), (
        float(jnp.max(jnp.abs(out - ref_bf))))

    print("KERNEL_OK")
</pallas_src>

<mosaic_0001>
module attributes {stable_mosaic.version = 11 : i64} {
  func.func @_fused_mlp_kernel(%arg0: i32, %arg1: memref<16x128xf32, #tpu.memory_space<vmem>>, %arg2: memref<128x128xbf16, #tpu.memory_space<vmem>>, %arg3: memref<1x128xf32, #tpu.memory_space<vmem>>, %arg4: memref<128x128xbf16, #tpu.memory_space<vmem>>, %arg5: memref<1x128xf32, #tpu.memory_space<vmem>>, %arg6: memref<128x128xbf16, #tpu.memory_space<vmem>>, %arg7: memref<1x128xf32, #tpu.memory_space<vmem>>, %arg8: memref<16x128xf32, #tpu.memory_space<vmem>>) attributes {dimension_semantics = [#tpu.dimension_semantics<parallel>], iteration_bounds = array<i64: 1>, scalar_prefetch = 0 : i64, scratch_operands = 0 : i64, tpu.core_type = #tpu.core_type<tc>, window_params = [{transform_indices = @transform_0, window_bounds = array<i64: 16, 128>}, {pipeline_mode = #tpu.pipeline_mode<synchronous>, transform_indices = @transform_1, window_bounds = array<i64: 128, 128>}, {pipeline_mode = #tpu.pipeline_mode<synchronous>, transform_indices = @transform_2, window_bounds = array<i64: 1, 128>}, {pipeline_mode = #tpu.pipeline_mode<synchronous>, transform_indices = @transform_3, window_bounds = array<i64: 128, 128>}, {pipeline_mode = #tpu.pipeline_mode<synchronous>, transform_indices = @transform_4, window_bounds = array<i64: 1, 128>}, {pipeline_mode = #tpu.pipeline_mode<synchronous>, transform_indices = @transform_5, window_bounds = array<i64: 128, 128>}, {pipeline_mode = #tpu.pipeline_mode<synchronous>, transform_indices = @transform_6, window_bounds = array<i64: 1, 128>}, {transform_indices = @transform_7, window_bounds = array<i64: 16, 128>}]} {
    %c0 = arith.constant 0 : index
    %c0_0 = arith.constant 0 : index
    %0 = vector.load %arg1[%c0, %c0_0] : memref<16x128xf32, #tpu.memory_space<vmem>>, vector<16x128xf32>
    %c0_1 = arith.constant 0 : index
    %c0_2 = arith.constant 0 : index
    %1 = vector.load %arg2[%c0_1, %c0_2] : memref<128x128xbf16, #tpu.memory_space<vmem>>, vector<128x128xbf16>
    %c0_3 = arith.constant 0 : index
    %c0_4 = arith.constant 0 : index
    %2 = vector.load %arg3[%c0_3, %c0_4] : memref<1x128xf32, #tpu.memory_space<vmem>>, vector<1x128xf32>
    %3 = arith.truncf %0 : vector<16x128xf32> to vector<16x128xbf16>
    %cst = arith.constant dense<0.000000e+00> : vector<16x128xf32>
    %4 = tpu.matmul %3, %1, %cst {dimension_numbers = #tpu.dot_dimension_numbers<[1], [0], [0], [1], [0, 0, 1, 1], [], []>} : vector<16x128xbf16>, vector<128x128xbf16>, vector<16x128xf32> -> vector<16x128xf32>
    %5 = vector.broadcast %2 : vector<1x128xf32> to vector<16x128xf32>
    %6 = arith.addf %4, %5 : vector<16x128xf32>
    %cst_5 = arith.constant 0.000000e+00 : f32
    %7 = vector.broadcast %cst_5 : f32 to vector<16x128xf32>
    %8 = arith.maximumf %6, %7 : vector<16x128xf32>
    %c0_6 = arith.constant 0 : index
    %c0_7 = arith.constant 0 : index
    %9 = vector.load %arg4[%c0_6, %c0_7] : memref<128x128xbf16, #tpu.memory_space<vmem>>, vector<128x128xbf16>
    %c0_8 = arith.constant 0 : index
    %c0_9 = arith.constant 0 : index
    %10 = vector.load %arg5[%c0_8, %c0_9] : memref<1x128xf32, #tpu.memory_space<vmem>>, vector<1x128xf32>
    %11 = arith.truncf %8 : vector<16x128xf32> to vector<16x128xbf16>
    %cst_10 = arith.constant dense<0.000000e+00> : vector<16x128xf32>
    %12 = tpu.matmul %11, %9, %cst_10 {dimension_numbers = #tpu.dot_dimension_numbers<[1], [0], [0], [1], [0, 0, 1, 1], [], []>} : vector<16x128xbf16>, vector<128x128xbf16>, vector<16x128xf32> -> vector<16x128xf32>
    %13 = vector.broadcast %10 : vector<1x128xf32> to vector<16x128xf32>
    %14 = arith.addf %12, %13 : vector<16x128xf32>
    %cst_11 = arith.constant 0.000000e+00 : f32
    %15 = vector.broadcast %cst_11 : f32 to vector<16x128xf32>
    %16 = arith.maximumf %14, %15 : vector<16x128xf32>
    %c0_12 = arith.constant 0 : index
    %c0_13 = arith.constant 0 : index
    %17 = vector.load %arg6[%c0_12, %c0_13] : memref<128x128xbf16, #tpu.memory_space<vmem>>, vector<128x128xbf16>
    %c0_14 = arith.constant 0 : index
    %c0_15 = arith.constant 0 : index
    %18 = vector.load %arg7[%c0_14, %c0_15] : memref<1x128xf32, #tpu.memory_space<vmem>>, vector<1x128xf32>
    %19 = arith.truncf %16 : vector<16x128xf32> to vector<16x128xbf16>
    %cst_16 = arith.constant dense<0.000000e+00> : vector<16x128xf32>
    %20 = tpu.matmul %19, %17, %cst_16 {dimension_numbers = #tpu.dot_dimension_numbers<[1], [0], [0], [1], [0, 0, 1, 1], [], []>} : vector<16x128xbf16>, vector<128x128xbf16>, vector<16x128xf32> -> vector<16x128xf32>
    %21 = vector.broadcast %18 : vector<1x128xf32> to vector<16x128xf32>
    %22 = arith.addf %20, %21 : vector<16x128xf32>
    %c0_17 = arith.constant 0 : index
    %c0_18 = arith.constant 0 : index
    %23 = vector.load %arg8[%c0_17, %c0_18] : memref<16x128xf32, #tpu.memory_space<vmem>>, vector<16x128xf32>
    tpu.vector_store %arg8[%c0_17, %c0_18], %22 {strides = array<i32>} : memref<16x128xf32, #tpu.memory_space<vmem>>, vector<16x128xf32>,
    return
  }
  func.func @transform_0(%arg0: i32) -> (i32, i32) {
    %c0_i32 = arith.constant 0 : i32
    %c0_i32_0 = arith.constant 0 : i32
    return %arg0, %c0_i32 : i32, i32
  }
  func.func @transform_1(%arg0: i32) -> (i32, i32) {
    %c0_i32 = arith.constant 0 : i32
    %c0_i32_0 = arith.constant 0 : i32
    %c0_i32_1 = arith.constant 0 : i32
    return %c0_i32, %c0_i32_0 : i32, i32
  }
  func.func @transform_2(%arg0: i32) -> (i32, i32) {
    %c0_i32 = arith.constant 0 : i32
    %c0_i32_0 = arith.constant 0 : i32
    %c0_i32_1 = arith.constant 0 : i32
    return %c0_i32, %c0_i32_0 : i32, i32
  }
  func.func @transform_3(%arg0: i32) -> (i32, i32) {
    %c0_i32 = arith.constant 0 : i32
    %c0_i32_0 = arith.constant 0 : i32
    %c0_i32_1 = arith.constant 0 : i32
    return %c0_i32, %c0_i32_0 : i32, i32
  }
  func.func @transform_4(%arg0: i32) -> (i32, i32) {
    %c0_i32 = arith.constant 0 : i32
    %c0_i32_0 = arith.constant 0 : i32
    %c0_i32_1 = arith.constant 0 : i32
    return %c0_i32, %c0_i32_0 : i32, i32
  }
  func.func @transform_5(%arg0: i32) -> (i32, i32) {
    %c0_i32 = arith.constant 0 : i32
    %c0_i32_0 = arith.constant 0 : i32
    %c0_i32_1 = arith.constant 0 : i32
    return %c0_i32, %c0_i32_0 : i32, i32
  }
  func.func @transform_6(%arg0: i32) -> (i32, i32) {
    %c0_i32 = arith.constant 0 : i32
    %c0_i32_0 = arith.constant 0 : i32
    %c0_i32_1 = arith.constant 0 : i32
    return %c0_i32, %c0_i32_0 : i32, i32
  }
  func.func @transform_7(%arg0: i32) -> (i32, i32) {
    %c0_i32 = arith.constant 0 : i32
    %c0_i32_0 = arith.constant 0 : i32
    return %arg0, %c0_i32 : i32, i32
  }
}

</mosaic_0001>

<bundles_post_ra>
// kernel: _forward.1
= control target key start
LH: loop header
LB: loop body
LE: loop exit
PB: predicated region body
PF: predicated region fallthrough
CT: control target
= control target key end

     0   :  { %12 = vsyncpa [#allocation3], 0  ;;  %s615_s0 = inlined_call_operand.vmem [shape: f32[16,128], index: 0, kind: input, shape index: {}]   ;;  %s616_s1 = inlined_call_operand.hbm [shape: bf16[128,128], index: 1, kind: input, shape index: {}]   ;;  %s617_s2 = inlined_call_operand.vmem [shape: f32[1,128], index: 2, kind: input, shape index: {}]   ;;  %s618_s3 = inlined_call_operand.hbm [shape: bf16[128,128], index: 3, kind: input, shape index: {}]   ;;  %s619_s4 = inlined_call_operand.vmem [shape: f32[1,128], index: 4, kind: input, shape index: {}]   ;;  %s620_s5 = inlined_call_operand.hbm [shape: bf16[128,128], index: 5, kind: input, shape index: {}]   ;;  %s621_s6 = inlined_call_operand.vmem [shape: f32[1,128], index: 6, kind: input, shape index: {}]   ;;  %s622_s7 = inlined_call_operand.vmem [shape: f32[16,128], index: 7, kind: output, shape index: {}]  }
   0x1   :  { %13 = vsyncpa [#allocation5], 0  ;;  %s35_s26 = sshll.u32 %s618_s3, 4  ;;  %s540_s27 = smov [#allocation4]   ;;  %s36_s26 = int_to_ptr.hbm [resolvable:$true] %s35_s26 }
   0x2   :  { %s37_s28 = sshll.u32 %s540_s27, 4  ;;  %s20_s8 = sshll.u32 %s616_s1, 4  ;;  %s38_s28 = int_to_ptr.vmem [resolvable:$true] %s37_s28  ;;  %s21_s8 = int_to_ptr.hbm [resolvable:$true] %s20_s8 }
   0x3   :  { %s541_s9 = smov 64   ;;  %s542_s10 = smov 4  }
   0x4   :  { %43 = dma.hbm_to_vmem [thread:$0]  %s36_s26, 1024, %s38_s28, [#allocation5], %s541_s9, %s541_s9, %s542_s10  }
   0x5   :  { %s543_s11 = smov [#allocation2]   ;;  %s50_s15 = sshll.u32 %s620_s5, 4  ;;  %s51_s15 = int_to_ptr.hbm [resolvable:$true] %s50_s15 }
   0x6   :  { %s22_s12 = sshll.u32 %s543_s11, 4  ;;  %s544_s3 = smov [#allocation6]   ;;  %s23_s12 = int_to_ptr.vmem [resolvable:$true] %s22_s12 }
   0x7   :  { %28 = dma.hbm_to_vmem [thread:$0]  %s21_s8, 1024, %s23_s12, [#allocation3], %s541_s9, %s541_s9, %s542_s10  }
   0x8   :  { %s52_s16 = sshll.u32 %s544_s3, 4  ;;  %s53_s16 = int_to_ptr.vmem [resolvable:$true] %s52_s16 }
   0x9   :  { %58 = dma.hbm_to_vmem [thread:$0]  %s51_s15, 1024, %s53_s16, [#allocation5], %s541_s9, %s541_s9, %s542_s10  }
   0xa   :  { %536 = dma.done.wait [#allocation3], 1024  }
   0xb   :  { %537 = vsyncadd [#allocation3], 4294966272 }
   0xc   :  { %538 = dma.done.wait [#allocation5], 2048  }
   0xd   :  { %539 = vsyncadd [#allocation5], 4294965248  ;;  %v439_v0 = vld [vmem:[#allocation2 + $0x38] sm:$0xff]  ;;  %v438_v1 = vld [vmem:[#allocation2 + $0x30] sm:$0xff] }
   0xe   :  { %144 = vmatpush.bf16.msra.mxu0 %v439_v0  ;;  %v447_v2 = vld [vmem:[#allocation4 + $0x38] sm:$0xff]  ;;  %v446_v3 = vld [vmem:[#allocation4 + $0x30] sm:$0xff]  ;;  %v437_v4 = vld [vmem:[#allocation2 + $0x28] sm:$0xff] }
   0xf   :  { %229 = vmatpush.bf16.msra.mxu1 %v447_v2  ;;  %v445_v5 = vld [vmem:[#allocation4 + $0x28] sm:$0xff]  ;;  %v436_v6 = vld [vmem:[#allocation2 + $0x20] sm:$0xff]  ;;  %v435_v8 = vld [vmem:[#allocation2 + $0x18] sm:$0xff] }
  0x10   :  { %v444_v7 = vld [vmem:[#allocation4 + $0x20] sm:$0xff]  ;;  %v434_v9 = vld [vmem:[#allocation2 + $0x10] sm:$0xff]  ;;  %v433_v10 = vld [vmem:[#allocation2 + $0x8] sm:$0xff] }
  0x11   :  { %v432_v11 = vld [vmem:[#allocation2] sm:$0xff]  ;;  %v74_v13 = vld [vmem:[%s615_s0 + $0x8] sm:$0xff]  ;;  %v443_v15 = vld [vmem:[#allocation4 + $0x18] sm:$0xff] }
  0x12   :  { %145 = vmatpush.bf16.msra.mxu0 %v438_v1  ;;  %v73_v12 = vld [vmem:[%s615_s0] sm:$0xff]  ;;  %v442_v16 = vld [vmem:[#allocation4 + $0x10] sm:$0xff]  ;;  %v441_v17 = vld [vmem:[#allocation4 + $0x8] sm:$0xff] }
  0x13   :  { %230 = vmatpush.bf16.msra.mxu1 %v446_v3  ;;  %v92_v14 = vpack.c.bf16 %v74_v13, %v73_v12  ;;  %v440_v18 = vld [vmem:[#allocation4] sm:$0xff]  ;;  %v455_v19 = vld [vmem:[#allocation6 + $0x38] sm:$0xff]  ;;  %v454_v20 = vld [vmem:[#allocation6 + $0x30] sm:$0xff] }
  0x14   :  { %314 = vmatpush.bf16.msra.mxu2 %v455_v19  ;;  %v453_v21 = vld [vmem:[#allocation6 + $0x28] sm:$0xff]  ;;  %v452_v22 = vld [vmem:[#allocation6 + $0x20] sm:$0xff]  ;;  %v451_v31 = vld [vmem:[#allocation6 + $0x18] sm:$0xff] }
  0x15   :  { %v461_v24 = vld [vmem:[%s617_s2] ss:$0 sm:$0xff]  ;;  %v450_v32 = vld [vmem:[#allocation6 + $0x10] sm:$0xff]  ;;  %v449_v33 = vld [vmem:[#allocation6 + $0x8] sm:$0xff] }
  0x16   :  { %146 = vmatpush.bf16.msra.mxu0 %v437_v4  ;;  %v448_v34 = vld [vmem:[#allocation6] sm:$0xff] }
  0x17   :  { %231 = vmatpush.bf16.msra.mxu1 %v445_v5  ;;  %v462_v36 = vld [vmem:[%s619_s4] ss:$0 sm:$0xff] }
  0x18   :  { %315 = vmatpush.bf16.msra.mxu2 %v454_v20  ;;  %v463_v43 = vld [vmem:[%s621_s6] ss:$0 sm:$0xff] }
  0x1a   :  { %147 = vmatpush.bf16.msra.mxu0 %v436_v6 }
  0x1b   :  { %232 = vmatpush.bf16.msra.mxu1 %v444_v7 }
  0x1c   :  { %316 = vmatpush.bf16.msra.mxu2 %v453_v21 }
  0x1e   :  { %148 = vmatpush.bf16.msra.mxu0 %v435_v8 }
  0x1f   :  { %233 = vmatpush.bf16.msra.mxu1 %v443_v15 }
  0x20   :  { %317 = vmatpush.bf16.msra.mxu2 %v452_v22 }
  0x22   :  { %149 = vmatpush.bf16.msra.mxu0 %v434_v9 }
  0x23   :  { %234 = vmatpush.bf16.msra.mxu1 %v442_v16 }
  0x24   :  { %318 = vmatpush.bf16.msra.mxu2 %v451_v31 }
  0x26   :  { %150 = vmatpush.bf16.msra.mxu0 %v433_v10 }
  0x27   :  { %235 = vmatpush.bf16.msra.mxu1 %v441_v17 }
  0x28   :  { %319 = vmatpush.bf16.msra.mxu2 %v450_v32 }
  0x2a   :  { %151 = vmatpush.bf16.msra.mxu0 %v432_v11 }
  0x2b   :  { %236 = vmatpush.bf16.msra.mxu1 %v440_v18 }
  0x2c   :  { %320 = vmatpush.bf16.msra.mxu2 %v449_v33 }
  0x2d   :  { %152 = vmatmul.bf16.vlgmr.msra.gmra.mxu0 %v92_v14 }
  0x30   :  { %321 = vmatpush.bf16.msra.mxu2 %v448_v34 }
  0xaa   :  { %v153_v23 = vpop.f32.mrf.mxu0 }
  0xab   :  { %v154_v25 = vadd.f32 %v461_v24, %v153_v23 }
  0xad   :  { %v158_v28 = vmax.f32 %v154_v25, 0.0 }
  0xb2   :  { %v155_v26 = vpop.f32.mrf.mxu0 }
  0xb3   :  { %v156_v27 = vadd.f32 %v461_v24, %v155_v26 }
  0xb5   :  { %v159_v29 = vmax.f32 %v156_v27, 0.0 }
  0xb7   :  { %v177_v30 = vpack.c.bf16 %v159_v29, %v158_v28 }
  0xb9   :  { %237 = vmatmul.bf16.vlgmr.msra.gmra.mxu1 %v177_v30 }
 0x136   :  { %v238_v35 = vpop.f32.mrf.mxu1 }
 0x137   :  { %v239_v37 = vadd.f32 %v462_v36, %v238_v35 }
 0x139   :  { %v243_v40 = vmax.f32 %v239_v37, 0.0 }
 0x13e   :  { %v240_v38 = vpop.f32.mrf.mxu1 }
 0x13f   :  { %v241_v39 = vadd.f32 %v462_v36, %v240_v38 }
 0x141   :  { %v244_v41 = vmax.f32 %v241_v39, 0.0 }
 0x143   :  { %v262_v42 = vpack.c.bf16 %v244_v41, %v243_v40 }
 0x145   :  { %322 = vmatmul.bf16.vlgmr.msra.gmra.mxu2 %v262_v42 }
 0x1c8   :  { %v323_v44 = vpop.f32.mrf.mxu2 }
 0x1c9   :  { %v324_v45 = vadd.f32 %v463_v43, %v323_v44 }
 0x1cb   :  { %328 = vst [vmem:[%s622_s7] sm:$0xff] %v324_v45 }
 0x1d0   :  { %v325_v46 = vpop.f32.mrf.mxu2 }
 0x1d1   :  { %v326_v47 = vadd.f32 %v463_v43, %v325_v46 }
 0x1d3   :  { %329 = vst [vmem:[%s622_s7 + $0x8] sm:$0xff] %v326_v47 }
 0x1d4   :  { %334 = vsyncpa [#allocation3], 1 }
 0x1d5   :  { %335 = vsyncpa [#allocation5], 1 }

</bundles_post_ra>
